<compile_context>
chip_gen: v7x
topology: tpu7x:2x2x1
jax: 0.10.0
libtpu: 0.0.40
codegen_flags: <defaults>
</compile_context>

<pallas_src>
import jax
import jax.numpy as jnp
from jax import lax
from jax.experimental import pallas as pl
from jax.experimental.pallas import tpu as pltpu  # noqa: F401  (TPU backend)

EPS = 1e-5


# ---------------------------------------------------------------------------
# Fused Pallas kernel: conv matmul -> BN (batch stats) -> ReLU -> maxpool ->
# flatten -> FC.  Only dot / elementwise / lane slices / lane concat are used.
# ---------------------------------------------------------------------------
def fused_forward_kernel(patches_ref, wblk_ref, bc_ref, gamma_ref, beta_ref,
                         cmat_ref, smat_ref, mask_ref, wfc_ref, bfc_ref,
                         out_ref):
    n_cout = wblk_ref.shape[0]            # N*Cout rows
    n_pix = patches_ref.shape[1]          # H*W columns (lane-dense)
    n_batch = smat_ref.shape[0]           # N
    cout = n_cout // n_batch
    p = n_pix // 4                        # Hp*Wp (one pool-window block)
    inv_cnt = 1.0 / (float(n_batch) * float(n_pix))   # 1 / (N*H*W)

    # --- Conv2d(3x3, pad=1): one MXU matmul on block-diagonal weights --------
    # (N*Cout, N*9*Cin) @ (N*9*Cin, H*W) -> (N*Cout, H*W)
    y = jnp.dot(wblk_ref[...], patches_ref[...],
                preferred_element_type=jnp.float32)
    y = y + bc_ref[...]                                       # conv bias

    # --- BatchNorm2d (training-mode batch stats), single pass ----------------
    s = jnp.sum(y, axis=1, keepdims=True)                     # (N*Cout, 1)
    ss = jnp.sum(y * y, axis=1, keepdims=True)                # (N*Cout, 1)
    # Combine partial sums of rows that share a channel and broadcast back
    # per-row, in one tiny constant matmul (avoids sublane slicing/reshape).
    s_all = jnp.dot(cmat_ref[...], s, preferred_element_type=jnp.float32)
    ss_all = jnp.dot(cmat_ref[...], ss, preferred_element_type=jnp.float32)
    mean = s_all * inv_cnt
    var = ss_all * inv_cnt - mean * mean                      # biased variance
    y = (y - mean) * lax.rsqrt(var + EPS)
    y = y * gamma_ref[...] + beta_ref[...]

    # --- ReLU -----------------------------------------------------------------
    y = jnp.maximum(y, 0.0)

    # --- MaxPool2d(2,2): columns ordered (dh, dw, hp, wp) ----------------------
    pooled = jnp.maximum(jnp.maximum(y[:, 0 * p:1 * p], y[:, 1 * p:2 * p]),
                         jnp.maximum(y[:, 2 * p:3 * p], y[:, 3 * p:4 * p]))

    # --- flatten to PyTorch (N, Cout*Hp*Wp) NCHW order, then Linear ------------
    rep = jnp.concatenate([pooled] * cout, axis=1)            # (N*Cout, Cout*P)
    flat = jnp.dot(smat_ref[...], rep * mask_ref[...],
                   preferred_element_type=jnp.float32)        # (N, Cout*P)
    out_ref[...] = jnp.dot(flat, wfc_ref[...],
                           preferred_element_type=jnp.float32) + bfc_ref[...]


# ---------------------------------------------------------------------------
# Wrapper: builds the lane-dense patch matrix and the small constant matrices,
# then runs the single fused pallas_call.
# ---------------------------------------------------------------------------
def my_model_forward(x, Wc, bc, gamma, beta, Wfc, bfc):
    N, Cin, H, W = x.shape
    Cout = Wc.shape[0]
    O = Wfc.shape[0]
    Hp, Wp = H // 2, W // 2
    P = Hp * Wp
    OPAD = max(128, ((O + 127) // 128) * 128)     # lane-dense FC output
    f32 = jnp.float32

    # ---- data glue: transposed im2col with (dh, dw, hp, wp)-blocked columns --
    # patches[n*9*Cin + (ky*3+kx)*Cin + ci, (dh*2+dw)*P + hp*Wp + wp]
    #     = xpad[n, ci, 2*hp+dh+ky, 2*wp+dw+kx]
    # TODO(synk): for large inputs, replace this XLA gather with in-kernel
    # shifted matmuls on the padded input to avoid materializing 9x patches.
    xpad = jnp.pad(x, ((0, 0), (0, 0), (1, 1), (1, 1)))
    cols = []
    for ky in range(3):
        for kx in range(3):
            w = xpad[:, :, ky:ky + H, kx:kx + W]           # (N, Cin, H, W)
            w = w.reshape(N, Cin, Hp, 2, Wp, 2)            # (..., hp, dh, wp, dw)
            w = jnp.transpose(w, (0, 1, 3, 5, 2, 4))       # (..., dh, dw, hp, wp)
            cols.append(w.reshape(N, Cin, 4 * P))
    patches = jnp.stack(cols, axis=1).reshape(N * 9 * Cin, 4 * P).astype(f32)

    # ---- weight / constant glue (x-independent; constant-folded under jit) ---
    Wmat = jnp.transpose(Wc, (0, 2, 3, 1)).reshape(Cout, 9 * Cin)   # (c | ky,kx,ci)
    Wblk = jnp.kron(jnp.eye(N, dtype=f32), Wmat.astype(f32))        # block-diag
    bc_rows = jnp.tile(bc.reshape(Cout, 1).astype(f32), (N, 1))
    gamma_rows = jnp.tile(gamma.reshape(Cout, 1).astype(f32), (N, 1))
    beta_rows = jnp.tile(beta.reshape(Cout, 1).astype(f32), (N, 1))
    eye_c = jnp.eye(Cout, dtype=f32)
    cmat = jnp.tile(eye_c, (N, N))                                   # same-channel combine
    smat = jnp.kron(jnp.eye(N, dtype=f32), jnp.ones((1, Cout), f32))  # batch row-group sum
    mask = jnp.tile(jnp.repeat(eye_c, P, axis=1), (N, 1))            # channel-block select
    wfc_pad = jnp.zeros((Cout * P, OPAD), f32).at[:, :O].set(Wfc.T.astype(f32))
    bfc_pad = jnp.zeros((1, OPAD), f32).at[:, :O].set(bfc.astype(f32))

    out_pad = pl.pallas_call(
        fused_forward_kernel,
        out_shape=jax.ShapeDtypeStruct((N, OPAD), f32),
    )(patches, Wblk, bc_rows, gamma_rows, beta_rows,
      cmat, smat, mask, wfc_pad, bfc_pad)
    return out_pad[:, :O]


# ---------------------------------------------------------------------------
# Independent pure-JAX reference (validates conv / BN / pool / flatten order)
# ---------------------------------------------------------------------------
def reference_forward(x, Wc, bc, gamma, beta, Wfc, bfc):
    y = lax.conv_general_dilated(x, Wc, (1, 1), ((1, 1), (1, 1)),
                                 dimension_numbers=("NCHW", "OIHW", "NCHW"))
    y = y + bc.reshape(1, -1, 1, 1)
    mean = jnp.mean(y, axis=(0, 2, 3), keepdims=True)
    var = jnp.mean((y - mean) ** 2, axis=(0, 2, 3), keepdims=True)
    y = (y - mean) * lax.rsqrt(var + EPS)
    y = y * gamma.reshape(1, -1, 1, 1) + beta.reshape(1, -1, 1, 1)
    y = jnp.maximum(y, 0.0)
    y = lax.reduce_window(y, -jnp.inf, lax.max, (1, 1, 2, 2), (1, 1, 2, 2), "VALID")
    y = y.reshape(y.shape[0], -1)
    return y @ Wfc.T + bfc


if __name__ == "__main__":
    key = jax.random.PRNGKey(0)
    N, Cin, S = 2, 1, 16          # batch=2, input_channel=1, input_size=16
    Cout, O = 4, 10               # inter_feature=4, num_output=10
    K = Cout * (S // 2) * (S // 2)

    k1, k2, k3, k4, k5 = jax.random.split(key, 5)
    x = jax.random.normal(k1, (N, Cin, S, S), jnp.float32)
    Wc = jax.random.normal(k2, (Cout, Cin, 3, 3), jnp.float32) * 0.2
    bc = jax.random.normal(k3, (Cout,), jnp.float32) * 0.1
    gamma = jnp.ones((Cout,), jnp.float32)     # BatchNorm2d default weight
    beta = jnp.zeros((Cout,), jnp.float32)     # BatchNorm2d default bias
    Wfc = jax.random.normal(k4, (O, K), jnp.float32) * 0.05
    bfc = jax.random.normal(k5, (O,), jnp.float32) * 0.05

    fwd = jax.jit(my_model_forward)
    out = jax.block_until_ready(fwd(x, Wc, bc, gamma, beta, Wfc, bfc))

    ref = reference_forward(x, Wc, bc, gamma, beta, Wfc, bfc)
    assert out.shape == (N, O)
    assert jnp.allclose(out, ref, atol=1e-4, rtol=1e-4), (out, ref)
    print("KERNEL_OK")
</pallas_src>

<mosaic_0001>
module attributes {stable_mosaic.version = 11 : i64} {
  func.func @fused_forward_kernel(%arg0: memref<18x256xf32, #tpu.memory_space<vmem>>, %arg1: memref<8x18xf32, #tpu.memory_space<vmem>>, %arg2: memref<8x1xf32, #tpu.memory_space<vmem>>, %arg3: memref<8x1xf32, #tpu.memory_space<vmem>>, %arg4: memref<8x1xf32, #tpu.memory_space<vmem>>, %arg5: memref<8x8xf32, #tpu.memory_space<vmem>>, %arg6: memref<2x8xf32, #tpu.memory_space<vmem>>, %arg7: memref<8x256xf32, #tpu.memory_space<vmem>>, %arg8: memref<256x128xf32, #tpu.memory_space<vmem>>, %arg9: memref<1x128xf32, #tpu.memory_space<vmem>>, %arg10: memref<2x128xf32, #tpu.memory_space<vmem>>) attributes {dimension_semantics = [], scalar_prefetch = 0 : i64, scratch_operands = 0 : i64, tpu.core_type = #tpu.core_type<tc>} {
    %c0 = arith.constant 0 : index
    %c0_0 = arith.constant 0 : index
    %0 = vector.load %arg1[%c0, %c0_0] : memref<8x18xf32, #tpu.memory_space<vmem>>, vector<8x18xf32>
    %c0_1 = arith.constant 0 : index
    %c0_2 = arith.constant 0 : index
    %1 = vector.load %arg0[%c0_1, %c0_2] : memref<18x256xf32, #tpu.memory_space<vmem>>, vector<18x256xf32>
    %cst = arith.constant dense<0.000000e+00> : vector<8x256xf32>
    %2 = tpu.matmul %0, %1, %cst {dimension_numbers = #tpu.dot_dimension_numbers<[1], [0], [0], [1], [0, 0, 1, 1], [], []>} : vector<8x18xf32>, vector<18x256xf32>, vector<8x256xf32> -> vector<8x256xf32>
    %c0_3 = arith.constant 0 : index
    %c0_4 = arith.constant 0 : index
    %3 = vector.load %arg2[%c0_3, %c0_4] : memref<8x1xf32, #tpu.memory_space<vmem>>, vector<8x1xf32>
    %4 = vector.broadcast %3 : vector<8x1xf32> to vector<8x256xf32>
    %5 = arith.addf %2, %4 : vector<8x256xf32>
    %cst_5 = arith.constant dense<0.000000e+00> : vector<8xf32>
    %6 = vector.multi_reduction <add>, %5, %cst_5 [1] : vector<8x256xf32> to vector<8xf32>
    %7 = vector.shape_cast %6 : vector<8xf32> to vector<8x1xf32>
    %8 = arith.mulf %5, %5 : vector<8x256xf32>
    %cst_6 = arith.constant dense<0.000000e+00> : vector<8xf32>
    %9 = vector.multi_reduction <add>, %8, %cst_6 [1] : vector<8x256xf32> to vector<8xf32>
    %10 = vector.shape_cast %9 : vector<8xf32> to vector<8x1xf32>
    %c0_7 = arith.constant 0 : index
    %c0_8 = arith.constant 0 : index
    %11 = vector.load %arg5[%c0_7, %c0_8] : memref<8x8xf32, #tpu.memory_space<vmem>>, vector<8x8xf32>
    %cst_9 = arith.constant dense<0.000000e+00> : vector<8x1xf32>
    %12 = tpu.matmul %11, %7, %cst_9 {dimension_numbers = #tpu.dot_dimension_numbers<[1], [0], [0], [1], [0, 0, 1, 1], [], []>} : vector<8x8xf32>, vector<8x1xf32>, vector<8x1xf32> -> vector<8x1xf32>
    %c0_10 = arith.constant 0 : index
    %c0_11 = arith.constant 0 : index
    %13 = vector.load %arg5[%c0_10, %c0_11] : memref<8x8xf32, #tpu.memory_space<vmem>>, vector<8x8xf32>
    %cst_12 = arith.constant dense<0.000000e+00> : vector<8x1xf32>
    %14 = tpu.matmul %13, %10, %cst_12 {dimension_numbers = #tpu.dot_dimension_numbers<[1], [0], [0], [1], [0, 0, 1, 1], [], []>} : vector<8x8xf32>, vector<8x1xf32>, vector<8x1xf32> -> vector<8x1xf32>
    %cst_13 = arith.constant 0.001953125 : f32
    %15 = vector.broadcast %cst_13 : f32 to vector<8x1xf32>
    %16 = arith.mulf %12, %15 : vector<8x1xf32>
    %cst_14 = arith.constant 0.001953125 : f32
    %17 = vector.broadcast %cst_14 : f32 to vector<8x1xf32>
    %18 = arith.mulf %14, %17 : vector<8x1xf32>
    %19 = arith.mulf %16, %16 : vector<8x1xf32>
    %20 = arith.subf %18, %19 : vector<8x1xf32>
    %21 = vector.broadcast %16 : vector<8x1xf32> to vector<8x256xf32>
    %22 = arith.subf %5, %21 : vector<8x256xf32>
    %cst_15 = arith.constant 9.99999974E-6 : f32
    %23 = vector.broadcast %cst_15 : f32 to vector<8x1xf32>
    %24 = arith.addf %20, %23 : vector<8x1xf32>
    %25 = math.rsqrt %24 : vector<8x1xf32>
    %26 = vector.broadcast %25 : vector<8x1xf32> to vector<8x256xf32>
    %27 = arith.mulf %22, %26 : vector<8x256xf32>
    %c0_16 = arith.constant 0 : index
    %c0_17 = arith.constant 0 : index
    %28 = vector.load %arg3[%c0_16, %c0_17] : memref<8x1xf32, #tpu.memory_space<vmem>>, vector<8x1xf32>
    %29 = vector.broadcast %28 : vector<8x1xf32> to vector<8x256xf32>
    %30 = arith.mulf %27, %29 : vector<8x256xf32>
    %c0_18 = arith.constant 0 : index
    %c0_19 = arith.constant 0 : index
    %31 = vector.load %arg4[%c0_18, %c0_19] : memref<8x1xf32, #tpu.memory_space<vmem>>, vector<8x1xf32>
    %32 = vector.broadcast %31 : vector<8x1xf32> to vector<8x256xf32>
    %33 = arith.addf %30, %32 : vector<8x256xf32>
    %cst_20 = arith.constant 0.000000e+00 : f32
    %34 = vector.broadcast %cst_20 : f32 to vector<8x256xf32>
    %35 = arith.maximumf %33, %34 : vector<8x256xf32>
    %36 = vector.extract_strided_slice %35 {offsets = [0, 0], sizes = [8, 64], strides = [1, 1]} : vector<8x256xf32> to vector<8x64xf32>
    %37 = vector.extract_strided_slice %35 {offsets = [0, 64], sizes = [8, 64], strides = [1, 1]} : vector<8x256xf32> to vector<8x64xf32>
    %38 = arith.maximumf %36, %37 : vector<8x64xf32>
    %39 = vector.extract_strided_slice %35 {offsets = [0, 128], sizes = [8, 64], strides = [1, 1]} : vector<8x256xf32> to vector<8x64xf32>
    %40 = vector.extract_strided_slice %35 {offsets = [0, 192], sizes = [8, 64], strides = [1, 1]} : vector<8x256xf32> to vector<8x64xf32>
    %41 = arith.maximumf %39, %40 : vector<8x64xf32>
    %42 = arith.maximumf %38, %41 : vector<8x64xf32>
    %43 = tpu.concatenate %42, %42, %42, %42 in 1 : vector<8x64xf32>, vector<8x64xf32>, vector<8x64xf32>, vector<8x64xf32> -> vector<8x256xf32>
    %c0_21 = arith.constant 0 : index
    %c0_22 = arith.constant 0 : index
    %44 = vector.load %arg6[%c0_21, %c0_22] : memref<2x8xf32, #tpu.memory_space<vmem>>, vector<2x8xf32>
    %c0_23 = arith.constant 0 : index
    %c0_24 = arith.constant 0 : index
    %45 = vector.load %arg7[%c0_23, %c0_24] : memref<8x256xf32, #tpu.memory_space<vmem>>, vector<8x256xf32>
    %46 = arith.mulf %43, %45 : vector<8x256xf32>
    %cst_25 = arith.constant dense<0.000000e+00> : vector<2x256xf32>
    %47 = tpu.matmul %44, %46, %cst_25 {dimension_numbers = #tpu.dot_dimension_numbers<[1], [0], [0], [1], [0, 0, 1, 1], [], []>} : vector<2x8xf32>, vector<8x256xf32>, vector<2x256xf32> -> vector<2x256xf32>
    %c0_26 = arith.constant 0 : index
    %c0_27 = arith.constant 0 : index
    %48 = vector.load %arg8[%c0_26, %c0_27] : memref<256x128xf32, #tpu.memory_space<vmem>>, vector<256x128xf32>
    %cst_28 = arith.constant dense<0.000000e+00> : vector<2x128xf32>
    %49 = tpu.matmul %47, %48, %cst_28 {dimension_numbers = #tpu.dot_dimension_numbers<[1], [0], [0], [1], [0, 0, 1, 1], [], []>} : vector<2x256xf32>, vector<256x128xf32>, vector<2x128xf32> -> vector<2x128xf32>
    %c0_29 = arith.constant 0 : index
    %c0_30 = arith.constant 0 : index
    %50 = vector.load %arg9[%c0_29, %c0_30] : memref<1x128xf32, #tpu.memory_space<vmem>>, vector<1x128xf32>
    %51 = vector.broadcast %50 : vector<1x128xf32> to vector<2x128xf32>
    %52 = arith.addf %49, %51 : vector<2x128xf32>
    %c0_31 = arith.constant 0 : index
    %c0_32 = arith.constant 0 : index
    %53 = vector.load %arg10[%c0_31, %c0_32] : memref<2x128xf32, #tpu.memory_space<vmem>>, vector<2x128xf32>
    tpu.vector_store %arg10[%c0_31, %c0_32], %52 {strides = array<i32>} : memref<2x128xf32, #tpu.memory_space<vmem>>, vector<2x128xf32>,
    return
  }
}

</mosaic_0001>

<bundles_post_ra>
// kernel: tile.41
= control target key start
LH: loop header
LB: loop body
LE: loop exit
PB: predicated region body
PF: predicated region fallthrough
CT: control target
= control target key end

     0   :  { %s76_s0 = inlined_call_operand.vmem [shape: f32[2,4,256], index: 0, kind: input, shape index: {}]   ;;  %s77_s1 = inlined_call_operand.vmem [shape: f32[8,256], index: 1, kind: output, shape index: {}]  }
   0x1   :  { %v36_v0 = vld [vmem:[%s76_s0 + $0xc] sm:$0xf]  ;;  %v37_v1 = vld [vmem:[%s76_s0 + $0x8] sm:$0xf]  ;;  %v38_v2 = vld [vmem:[%s76_s0 + $0x4] sm:$0xf] }
   0x2   :  { %8 = vst [vmem:[#allocation0 + $0x18] sm:$0xf] %v36_v0  ;;  %13 = vst [vmem:[#allocation0 + $0x10] sm:$0xf] %v37_v1  ;;  %v18_v3 = vld [vmem:[%s76_s0] sm:$0xf] }
   0x3   :  { %17 = vst [vmem:[#allocation0 + $0x8] sm:$0xf] %v38_v2  ;;  %19 = vst [vmem:[#allocation0] sm:$0xf] %v18_v3 }
   0x9   :  { %v27_v5 = vld [vmem:[#allocation0 + $0x10] sm:$0xf]   ;;  %v31_v6 = vld [vmem:[#allocation0 + $0x18] sm:$0xf]  }
   0xa   :  { %v23_v4 = vld [vmem:[#allocation0 + $0x8] sm:$0xf]   ;;  %v20_v7 = vld [vmem:[#allocation0] sm:$0xf]   ;;  %40 = vst [vmem:[%s77_s1 + $0x4] sm:$0xf] %v27_v5  }
   0xb   :  { %39 = vst [vmem:[%s77_s1 + $0x8] sm:$0xf] %v23_v4   ;;  %41 = vst [vmem:[%s77_s1 + $0xc] sm:$0xf] %v31_v6  }
   0xc   :  { %21 = vst [vmem:[%s77_s1] sm:$0xf] %v20_v7  }

// kernel: tile.36
= control target key start
LH: loop header
LB: loop body
LE: loop exit
PB: predicated region body
PF: predicated region fallthrough
CT: control target
= control target key end

     0   :  { %s82_s0 = inlined_call_operand.vmem [shape: f32[4,4], index: 0, kind: input, shape index: {}]   ;;  %s83_s1 = inlined_call_operand.vmem [shape: f32[2,4,2,4], index: 1, kind: output, shape index: {}]  }
   0x1   :  { %v4_v0 = vld [vmem:[%s82_s0] ss:$0 sm:$0xff]  ;;  %v27_v1 = vld [vmem:[%s82_s0 + $0x1] ss:$0 sm:$0xff]  ;;  %v30_v2 = vld [vmem:[%s82_s0 + $0x2] ss:$0 sm:$0xff] }
   0x2   :  { %5 = vst [vmem:[%s83_s1] sm:$0x3] %v4_v0  ;;  %26 = vst [vmem:[%s83_s1 + $0x8] sm:$0x3] %v4_v0  ;;  %v33_v3 = vld [vmem:[%s82_s0 + $0x3] ss:$0 sm:$0xff] }
   0x3   :  { %28 = vst [vmem:[%s83_s1 + $0x2] sm:$0x3] %v27_v1  ;;  %29 = vst [vmem:[%s83_s1 + $0xa] sm:$0x3] %v27_v1 }
   0x4   :  { %31 = vst [vmem:[%s83_s1 + $0x4] sm:$0x3] %v30_v2  ;;  %32 = vst [vmem:[%s83_s1 + $0xc] sm:$0x3] %v30_v2 }
   0x5   :  { %34 = vst [vmem:[%s83_s1 + $0x6] sm:$0x3] %v33_v3  ;;  %35 = vst [vmem:[%s83_s1 + $0xe] sm:$0x3] %v33_v3 }

// kernel: tile.37
= control target key start
LH: loop header
LB: loop body
LE: loop exit
PB: predicated region body
PF: predicated region fallthrough
CT: control target
= control target key end

     0   :  { %vm42_vm0 = vcmask 1047556   ;;  %vm44_vm1 = vcmask 31744   ;;  %vm54_vm2 = vcmask 64544   ;;  %s111_s0 = inlined_call_operand.vmem [shape: f32[2,4,2,4], index: 0, kind: input, shape index: {}]   ;;  %s112_s1 = inlined_call_operand.vmem [shape: f32[8,8], index: 1, kind: output, shape index: {}]  }
   0x1   :  { %v62_v0 = vld [vmem:[%s111_s0 + $0xe] sm:$0x3]  ;;  %v63_v1 = vld [vmem:[%s111_s0 + $0xc] sm:$0x3]  ;;  %v64_v2 = vld [vmem:[%s111_s0 + $0xa] sm:$0x3] }
   0x2   :  { %8 = vst [vmem:[#allocation0 + $0x38] sm:$0x3] %v62_v0  ;;  %13 = vst [vmem:[#allocation0 + $0x30] sm:$0x3] %v63_v1  ;;  %v65_v3 = vld [vmem:[%s111_s0 + $0x8] sm:$0x3] }
   0x3   :  { %18 = vst [vmem:[#allocation0 + $0x28] sm:$0x3] %v64_v2  ;;  %v66_v4 = vld [vmem:[%s111_s0 + $0x6] sm:$0x3]  ;;  %v67_v5 = vld [vmem:[%s111_s0 + $0x4] sm:$0x3] }
   0x4   :  { %23 = vst [vmem:[#allocation0 + $0x20] sm:$0x3] %v65_v3  ;;  %28 = vst [vmem:[#allocation0 + $0x18] sm:$0x3] %v66_v4  ;;  %v68_v6 = vld [vmem:[%s111_s0 + $0x2] sm:$0x3] }
   0x5   :  { %33 = vst [vmem:[#allocation0 + $0x10] sm:$0x3] %v67_v5  ;;  %v38_v7 = vld [vmem:[%s111_s0] sm:$0x3]  ;;  %37 = vst [vmem:[#allocation0 + $0x8] sm:$0x3] %v68_v6 }
   0x6   :  { %39 = vst [vmem:[#allocation0] sm:$0x3] %v38_v7  ;;  %s70_s0 = smov 4  }
   0xb   :  { %v41_v8 = vld [vmem:[#allocation0] ss:$8 sm:$0xf0]   ;;  %v49_v9 = vld [vmem:[#allocation0 + $0x1] ss:$8 sm:$0xf0]  }
   0xd   :  { %v40_v10 = vld [vmem:[#allocation0] ss:$8 sm:$0xf]   ;;  %v47_v11 = vld [vmem:[#allocation0 + $0x1] ss:$8 sm:$0xf]  }
   0xe   :  { %v43_v12 = vsel %vm42_vm0, %v41_v8, %v40_v10  ;;  %v51_v13 = vsel %vm42_vm0, %v49_v9, %v47_v11 }
   0xf   :  { %52 = vrot.lane.b32.xlu0 %v51_v13, %s70_s0  ;;  %45 = vst.msk [vmem:[%s112_s1] sm:$0xff] %vm44_vm1, %v43_v12  }
  0x81   :  { %v53_v14 = vpop.permute.xlu0 %52  }
  0x82   :  { %55 = vst.msk [vmem:[%s112_s1] sm:$0xff] %vm54_vm2, %v53_v14  }

// kernel: my_model_forward.1
= control target key start
LH: loop header
LB: loop body
LE: loop exit
PB: predicated region body
PF: predicated region fallthrough
CT: control target
= control target key end

     0   :  { %v667_v5 = vmov 0.0   ;;  %vm53_vm0 = vcmask 1041408   ;;  %v668_v8 = vmov 0   ;;  %s886_s0 = inlined_call_operand.vmem [shape: f32[18,256], index: 0, kind: input, shape index: {}]   ;;  %s887_s1 = inlined_call_operand.vmem [shape: f32[8,18], index: 1, kind: input, shape index: {}]   ;;  %s888_s2 = inlined_call_operand.vmem [shape: f32[8,1], index: 2, kind: input, shape index: {}]   ;;  %s889_s3 = inlined_call_operand.vmem [shape: f32[8,1], index: 3, kind: input, shape index: {}]   ;;  %s890_s4 = inlined_call_operand.vmem [shape: f32[8,1], index: 4, kind: input, shape index: {}]   ;;  %s891_s5 = inlined_call_operand.vmem [shape: f32[8,8], index: 5, kind: input, shape index: {}]   ;;  %s892_s6 = inlined_call_operand.vmem [shape: f32[2,8], index: 6, kind: input, shape index: {}]   ;;  %s893_s7 = inlined_call_operand.vmem [shape: f32[8,256], index: 7, kind: input, shape index: {}]   ;;  %s894_s8 = inlined_call_operand.vmem [shape: f32[256,128], index: 8, kind: input, shape index: {}]   ;;  %s895_s9 = inlined_call_operand.vmem [shape: f32[1,128], index: 9, kind: input, shape index: {}]   ;;  %s896_s10 = inlined_call_operand.hbm [shape: f32[2,128], index: 10, kind: output, shape index: {}]  }
   0x1   :  { %v38_v0 = vld [vmem:[%s886_s0 + $0x8] sm:$0xff]  ;;  %v40_v1 = vld [vmem:[%s886_s0 + $0x18] sm:$0xff]  ;;  %v37_v2 = vld [vmem:[%s886_s0] sm:$0xff]  ;;  %124 = vmatprep.mubr.f32.mxu0 %v667_v5  ;;  %639 = vset.pattern.permute.xlu0 %v668_v8 }
   0x2   :  { %v598_v3 = vpack.c.bf16 %v40_v1, %v38_v0  ;;  %v39_v4 = vld [vmem:[%s886_s0 + $0x10] sm:$0xff]  ;;  %v42_v7 = vld [vmem:[%s886_s0 + $0x28] sm:$0x3]  ;;  %v43_v9 = vld [vmem:[%s888_s2] sm:$0xff]  ;;  %640 = vset.pattern.permute.xlu1 %v668_v8 }
   0x3   :  { %v600_v6 = vpack.c.bf16 %v39_v4, %v37_v2 }
   0x4   :  { %15 = vsyncpa [#allocation3], 0  ;;  %599 = vmatprep.subr.bf16.mxu0 %v598_v3  ;;  %46 = vperm.xlu0 %639, %v43_v9   ;;  %v41_v10 = vld [vmem:[%s886_s0 + $0x20] sm:$0x3]  ;;  %vm49_vm1 = vcmask 146432   ;;  %vm669_vm2 = vmmov 0  }
   0x5   :  { %601 = vmatpush1.bf16.msra.mxu0 %v600_v6  ;;  %v36_v11 = vld [vmem:[%s887_s1] sm:$0xff]  ;;  %vm140_vm3 = vcmask 64512   ;;  %s670_s30 = smov 64   ;;  %v435_v51 = vld [vmem:[%s894_s8 + $0x88] sm:$0xff]  ;;  %v436_v55 = vld [vmem:[%s894_s8 + $0x90] sm:$0xff]  ;;  %vm337_vm4 = vcmask 523264  }
   0x6   :  { %542 = vmatprep.subr.msk.mxu0 %vm53_vm0, %v42_v7  ;;  %v304_v21 = vld [vmem:[%s889_s3] sm:$0xff]  ;;  %v419_v54 = vld [vmem:[%s894_s8 + $0x8] sm:$0xff]  ;;  %v437_v56 = vld [vmem:[%s894_s8 + $0x98] sm:$0xff]  ;;  %s671_s28 = smov [#allocation2]  }
   0x7   :  { %v139_v22 = vld [vmem:[%s891_s5] sm:$0xff]  ;;  %v606_v58 = vpack.c.bf16 %v437_v56, %v436_v55  ;;  %v420_v59 = vld [vmem:[%s894_s8 + $0x10] sm:$0xff]  ;;  %v421_v60 = vld [vmem:[%s894_s8 + $0x18] sm:$0xff]  ;;  %s534_s0 = sshll.u32 %s671_s28, 4  ;;  %s535_s0 = int_to_ptr.vmem [resolvable:$true] %s534_s0 }
   0x8   :  { %v312_v35 = vld [vmem:[%s890_s4] sm:$0xff]  ;;  %v439_v0 = vld [vmem:[%s894_s8 + $0xa8] sm:$0xff]  ;;  %v608_v3 = vpack.c.bf16 %v421_v60, %v420_v59  ;;  %v440_v8 = vld [vmem:[%s894_s8 + $0xb0] sm:$0xff]  ;;  %s643_s2 = scalar_lea.vmem %s535_s0, 32  ;;  %p648_p1 = scmp.lt.s32.totalorder %s535_s0, %s535_s0 }
   0x9   :  { %543 = vmatpush1.msk.msra.mxu0 %vm53_vm0, %v41_v10  ;;  %v434_v50 = vld [vmem:[%s894_s8 + $0x80] sm:$0xff]  ;;  %v423_v6 = vld [vmem:[%s894_s8 + $0x28] sm:$0xff]  ;;  %v441_v9 = vld [vmem:[%s894_s8 + $0xb8] sm:$0xff]  ;;  %p644_p0 = scmp.ne.s32.totalorder %s535_s0, %s643_s2  ;;  %p649_p2 = scmp.lt.s32.totalorder %s643_s2, %s643_s2 }
   0xa   :  { %544 = vmatmul.mubr.msk.f32.vlgmr.msra.gmra.mrb[0].mxu0 %vm49_vm1, %v36_v11  ;;  %588 = vmatprep.subr.mxu0 %v667_v5  ;;  %v418_v52 = vld [vmem:[%s894_s8] sm:$0xff]  ;;  %v602_v53 = vpack.c.bf16 %v435_v51, %v434_v50  ;;  %v614_v11 = vpack.c.bf16 %v441_v9, %v440_v8 }
   0xb   :  { %590 = vmatprep.mubr.msk.f32.mxu0 %vm669_vm2, %v667_v5  ;;  %v604_v57 = vpack.c.bf16 %v419_v54, %v418_v52  ;;  %v438_v61 = vld [vmem:[%s894_s8 + $0xa0] sm:$0xff]  ;;  %p650_p3 = por %p649_p2, %p648_p1 }
   0xc   :  { %603 = vmatprep.subr.bf16.mxu1 %v602_v53  ;;  %v610_v4 = vpack.c.bf16 %v439_v0, %v438_v61  ;;  %v548_v50 = vld [vmem:[%s895_s9] ss:$0 sm:$0xff] }
   0xd   :  { %605 = vmatpush3.bf16.msra.mxu1 %v604_v57  ;;  %p651_p4 = pnand %p650_p3, %p644_p0 }
   0xe   :  { %607 = vmatprep.subr.bf16.mxu1 %v606_v58 }
  0x11   :  { %609 = vmatpush3.bf16.msra.mxu1 %v608_v3 }
  0x12   :  { %611 = vmatprep.subr.bf16.mxu1 %v610_v4 }
  0x83   :  { %v47_v12 = vpop.permute.xlu0 %46 }
  0xdd   :  { %v126_v13 = vpop.f32.mrb[0].mxu0 }
  0xde   :  { %v127_v14 = vadd.f32 %v126_v13, %v47_v12  ;;  %v128_v15 = vpop.f32.mrb[1].mxu0  ;;  %v425_v13 = vld [vmem:[%s894_s8 + $0x38] sm:$0xff] }
  0xdf   :  { %v129_v16 = vadd.f32 %v128_v15, %v47_v12  ;;  %v424_v12 = vld [vmem:[%s894_s8 + $0x30] sm:$0xff]  ;;  %v443_v15 = vld [vmem:[%s894_s8 + $0xc8] sm:$0xff] }
  0xe0   :  { %v134_v17 = vmul.f32 %v127_v14, %v127_v14 }
  0xe1   :  { %v131_v18 = vadd.f32 %v129_v16, %v127_v14  ;;  %v135_v19 = vmul.f32 %v129_v16, %v129_v16 }
  0xe3   :  { %132 = vadd.xlane.f32.xlu0 %v131_v18  ;;  %v136_v20 = vadd.f32 %v135_v19, %v134_v17  ;;  %v426_v18 = vld [vmem:[%s894_s8 + $0x40] sm:$0xff]  ;;  %v427_v19 = vld [vmem:[%s894_s8 + $0x48] sm:$0xff] }
  0xe5   :  { %137 = vadd.xlane.f32.xlu1 %v136_v20  ;;  %v444_v20 = vld [vmem:[%s894_s8 + $0xd0] sm:$0xff] }
  0xf6   :  { %307 = vperm.xlu1 %640, %v304_v21   ;;  %v445_v21 = vld [vmem:[%s894_s8 + $0xd8] sm:$0xff] }
 0x170   :  { %v133_v23 = vpop.xlane.xlu0 %132 }
 0x171   :  { %589 = vmatpush3.msra.mxu0 %v133_v23  ;;  %v622_v23 = vpack.c.bf16 %v445_v21, %v444_v20 }
 0x172   :  { %v138_v24 = vpop.xlane.xlu1 %137  ;;  %591 = vmatmul.mubr.msk.f32.vlgmr.msra.gmra.mrb[2].mxu0 %vm140_vm3, %v139_v22  ;;  %593 = vmatprep.subr.mxu0 %v667_v5 }
 0x173   :  { %594 = vmatpush3.msra.mxu0 %v138_v24  ;;  %595 = vmatprep.mubr.msk.f32.mxu0 %vm669_vm2, %v667_v5  ;;  %v428_v24 = vld [vmem:[%s894_s8 + $0x50] sm:$0xff] }
 0x176   :  { %596 = vmatmul.mubr.msk.f32.vlgmr.msra.gmra.mrb[4].mxu0 %vm140_vm3, %v139_v22  ;;  %v308_v36 = vpop.permute.xlu1 %307  ;;  %v620_v22 = vpack.c.bf16 %v427_v19, %v426_v18 }
 0x177   :  { %411 = vmatprep.mubr.f32.mxu0 %v667_v5  ;;  %v422_v5 = vld [vmem:[%s894_s8 + $0x20] sm:$0xff] }
 0x178   :  { %v612_v10 = vpack.c.bf16 %v423_v6, %v422_v5 }
 0x17a   :  { %613 = vmatpush3.bf16.msra.mxu1 %v612_v10 }
 0x17b   :  { %615 = vmatprep.subr.bf16.mxu1 %v614_v11 }
 0x245   :  { %v210_v25 = vpop.f32.mrb[2].mxu0 }
 0x246   :  { %v284_v26 = vmul.f32 0.001953125, %v210_v25  ;;  %v592_v27 = vpop.f32.mrb[3].mxu0  ;;  %v429_v25 = vld [vmem:[%s894_s8 + $0x58] sm:$0xff] }
 0x247   :  { %v447_v27 = vld [vmem:[%s894_s8 + $0xe8] sm:$0xff] }
 0x248   :  { %290 = vperm.xlu1 %640, %v284_v26   ;;  %v286_v29 = vmul.f32 %v284_v26, %v284_v26  ;;  %v446_v26 = vld [vmem:[%s894_s8 + $0xe0] sm:$0xff] }
 0x249   :  { %v280_v28 = vpop.f32.mrb[4].mxu0 }
 0x24a   :  { %v285_v30 = vmul.f32 0.001953125, %v280_v28  ;;  %v597_v31 = vpop.f32.mrb[5].mxu0  ;;  %v624_v28 = vpack.c.bf16 %v429_v25, %v428_v24 }
 0x24b   :  { %v431_v31 = vld [vmem:[%s894_s8 + $0x68] sm:$0xff] }
 0x24c   :  { %v287_v32 = vsub.f32 %v285_v30, %v286_v29  ;;  %v626_v29 = vpack.c.bf16 %v447_v27, %v446_v26  ;;  %v430_v30 = vld [vmem:[%s894_s8 + $0x60] sm:$0xff] }
 0x24e   :  { %v295_v33 = vadd.f32 1e-05, %v287_v32  ;;  %v448_v32 = vld [vmem:[%s894_s8 + $0xf0] sm:$0xff] }
 0x250   :  { %641 = vrsqrt.f32 %v295_v33  ;;  %v449_v33 = vld [vmem:[%s894_s8 + $0xf8] sm:$0xff] }
 0x25a   :  { %v642_v34 = vpop.eup %641 }
 0x25b   :  { %299 = vperm.xlu1 %640, %v642_v34   ;;  %v628_v34 = vpack.c.bf16 %v431_v31, %v430_v30 }
 0x25f   :  { %315 = vperm.xlu1 %640, %v312_v35   ;;  %v630_v35 = vpack.c.bf16 %v449_v33, %v448_v32 }
 0x2c7   :  { %v291_v37 = vpop.permute.xlu1 %290 }
 0x2c8   :  { %v293_v38 = vsub.f32 %v127_v14, %v291_v37  ;;  %v294_v39 = vsub.f32 %v129_v16, %v291_v37  ;;  %v442_v14 = vld [vmem:[%s894_s8 + $0xc0] sm:$0xff]  ;;  %v616_v16 = vpack.c.bf16 %v425_v13, %v424_v12  ;;  %v341_v37 = vld [vmem:[%s893_s7 + $0x8] sm:$0xff] }
 0x2c9   :  { %v618_v17 = vpack.c.bf16 %v443_v15, %v442_v14 }
 0x2ca   :  { %617 = vmatpush3.bf16.msra.mxu1 %v616_v16 }
 0x2cb   :  { %619 = vmatprep.subr.bf16.mxu1 %v618_v17 }
 0x2ce   :  { %621 = vmatpush3.bf16.msra.mxu1 %v620_v22 }
 0x2cf   :  { %623 = vmatprep.subr.bf16.mxu1 %v622_v23 }
 0x2d2   :  { %625 = vmatpush3.bf16.msra.mxu1 %v624_v28 }
 0x2d3   :  { %627 = vmatprep.subr.bf16.mxu1 %v626_v29 }
 0x2d6   :  { %629 = vmatpush3.bf16.msra.mxu1 %v628_v34 }
 0x2d7   :  { %631 = vmatprep.subr.bf16.mxu1 %v630_v35 }
 0x2da   :  { %v300_v40 = vpop.permute.xlu1 %299 }
 0x2db   :  { %v302_v41 = vmul.f32 %v300_v40, %v293_v38  ;;  %v303_v42 = vmul.f32 %v300_v40, %v294_v39 }
 0x2dd   :  { %v310_v43 = vmul.f32 %v308_v36, %v302_v41  ;;  %v311_v44 = vmul.f32 %v308_v36, %v303_v42  ;;  %v340_v36 = vld [vmem:[%s893_s7] sm:$0xff] }
 0x2de   :  { %v316_v45 = vpop.permute.xlu1 %315  ;;  %v339_v42 = vld [vmem:[%s892_s6] sm:$0x3] }
 0x2df   :  { %v318_v46 = vadd.f32 %v316_v45, %v310_v43  ;;  %v319_v47 = vadd.f32 %v316_v45, %v311_v44  ;;  %v432_v43 = vld [vmem:[%s894_s8 + $0x70] sm:$0xff]  ;;  %v433_v44 = vld [vmem:[%s894_s8 + $0x78] sm:$0xff] }
 0x2e0   :  { %v632_v45 = vpack.c.bf16 %v433_v44, %v432_v43 }
 0x2e1   :  { %v320_v48 = vmax.f32 %v318_v46, 0.0  ;;  %v321_v49 = vmax.f32 %v319_v47, 0.0 }
 0x2e2   :  { %633 = vmatpush3.bf16.msra.mxu1 %v632_v45 }
 0x2e3   :  { %328 = vrot.lane.b32.xlu0 %v321_v49, %s670_s30  ;;  %323 = vrot.lane.b32.xlu1 %v320_v48, %s670_s30 }
 0x355   :  { %v329_v62 = vpop.permute.xlu0 %328  ;;  %v324_v63 = vpop.permute.xlu1 %323 }
 0x356   :  { %v331_v1 = vmax.f32 %v321_v49, %v329_v62  ;;  %v326_v2 = vmax.f32 %v320_v48, %v324_v63 }
 0x358   :  { %v332_v7 = vmax.f32 %v326_v2, %v331_v1 }
 0x35a   :  { %334 = vrot.lane.b32.xlu1 %v332_v7, %s670_s30 }
 0x3cc   :  { %v335_v38 = vpop.permute.xlu1 %334 }
 0x3cd   :  { %v338_v39 = vsel %vm337_vm4, %v332_v7, %v335_v38 }
 0x3ce   :  { %v342_v40 = vmul.f32 %v340_v36, %v338_v39  ;;  %v343_v41 = vmul.f32 %v341_v37, %v338_v39 }
 0x3d0   :  { %347 = vmatprep.subr.mxu0 %v343_v41 }
 0x3d1   :  { %348 = vmatpush1.msra.mxu0 %v342_v40 }
 0x3d2   :  { %547 = vmatmul.mubr.msk.f32.vlgmr.msra.gmra.mrb[6].mxu0 %vm140_vm3, %v339_v42 }
 0x4a5   :  { %v413_v46 = vpop.f32.mrb[6].mxu0 }
 0x4a6   :  { %v415_v47 = vpop.f32.mrb[7].mxu0 }
 0x4a7   :  { %521 = vmatprep.mubr.f32.mxu1 %v415_v47 }
 0x4a8   :  { %522 = vmatmul.mubr.f32.vlgmr.msra.gmra.mrb[0].mxu1 %v413_v46 }
 0x57b   :  { %v585_v48 = vpop.f32.mrb[0].mxu1 }
 0x57c   :  { %v586_v49 = vpop.f32.mrb[1].mxu1 }
 0x57d   :  { %v587_v51 = vadd.f32 %v586_v49, %v585_v48 }
 0x57f   :  { %v524_v52 = vadd.f32 %v587_v51, %v548_v50 }
 0x581   :  { %527 = vst [vmem:[#allocation2] sm:$0x3] %v524_v52 }
 0x582   :  { %654 = shalt.err (!%p651_p4)
}
 0x583   :  { %s655_s29 = scalar_lea.hbm %s896_s10, 32 }
 0x584   :  { %p656_p5 = scmp.ne.s32.totalorder %s896_s10, %s655_s29  ;;  %p659_p6 = scmp.lt.u32.totalorder %s655_s29, %s896_s10 }
 0x586   :  { %p661_p7 = pnand %p659_p6, %p656_p5 }
 0x588   :  { %664 = shalt.err (!%p661_p7)
}
 0x589   :  { %537 = dma.vmem_to_hbm [thread:$0]  %s535_s0, 32, %s896_s10, [#allocation3]  }
 0x58a   :  { %665 = dma.done.wait [#allocation3], 32  }
 0x58b   :  { %666 = vsyncadd [#allocation3], 4294967264 }
 0x58c   :  { %541 = vsyncpa [#allocation3], 1 }

</bundles_post_ra>
